<compile_context>
chip_gen: v6e
topology: v6e:2x2x1
jax: 0.10.0
libtpu: 0.0.40
codegen_flags: <defaults>
</compile_context>

<pallas_src>
import functools

import jax
import jax.numpy as jnp
from jax.experimental import pallas as pl
from jax.experimental.pallas import tpu as pltpu

NUM_LABELS = 8

# murmur3-finalizer-style constants (used bit-exactly via signed int32 wrap math).
_HASH_C0 = 0x9E3779B9
_HASH_C1 = 0x7FEB352D
_HASH_C2 = 0x846CA68B


def _to_i32(v):
    """Reinterpret a 32-bit unsigned python int as a signed int32 python int."""
    v &= 0xFFFFFFFF
    return v - (1 << 32) if v >= (1 << 31) else v


def squeeze_nd(x, n, dim=0):
    """Squeeze `dim` until the array has rank n (mirrors brainsynth.squeeze_nd)."""
    while x.ndim > n:
        assert x.shape[dim] == 1, "squeeze_nd: leading dim must be singleton"
        x = jnp.squeeze(x, axis=dim)
    return x


def _srl(x, s):
    """Logical right shift on int32 (arithmetic shift + mask of sign bits)."""
    return (x >> s) & ((1 << (32 - s)) - 1)


def _synth_block(lab_ref, mu_ref, sg_ref, *, seed_mix, block_rows, cols):
    """Regenerate the synthetic intensity block from the label block.

    Deterministic: the random stream is a hash of (seed, global element index),
    so pass 1 (min/max) and pass 2 (render) see identical noise and the result
    does not depend on the tiling.
    """
    lab = lab_ref[...].astype(jnp.int32)          # int8 -> int32 unpack
    shape = lab.shape
    row0 = pl.program_id(0) * block_rows
    r = jax.lax.broadcasted_iota(jnp.int32, shape, 0)
    c = jax.lax.broadcasted_iota(jnp.int32, shape, 1)

    # Global linear element index mixed with the seed, then integer hash.
    h = (row0 + r) * cols + c + jnp.int32(_to_i32(seed_mix))
    h = h ^ _srl(h, 16)
    h = h * jnp.int32(_to_i32(_HASH_C1))
    h = h ^ _srl(h, 15)
    h = h * jnp.int32(_to_i32(_HASH_C2))
    h = h ^ _srl(h, 16)
    u = _srl(h, 9).astype(jnp.float32) * jnp.float32(1.0 / (1 << 23))  # [0,1)
    # TODO(synk): centered uniform noise stands in for the Gaussian GMM draw.
    noise = 2.0 * u - 1.0

    # Per-label LUT via shared-mask selects (labels >= NUM_LABELS map to 0).
    mu = jnp.zeros(shape, jnp.float32)
    sg = jnp.zeros(shape, jnp.float32)
    for k in range(NUM_LABELS):
        m = lab == k
        mu = jnp.where(m, mu_ref[k], mu)
        sg = jnp.where(m, sg_ref[k], sg)
    return mu + sg * noise


def _minmax_kernel(mu_ref, sg_ref, lab_ref, min_ref, max_ref,
                   *, seed_mix, block_rows, cols):
    """Pass 1: per-tile global-intensity min/max (no full-volume intermediate)."""
    x = _synth_block(lab_ref, mu_ref, sg_ref,
                     seed_mix=seed_mix, block_rows=block_rows, cols=cols)
    min_ref[...] = jnp.broadcast_to(jnp.min(x), min_ref.shape)
    max_ref[...] = jnp.broadcast_to(jnp.max(x), max_ref.shape)


def _render_kernel(mu_ref, sg_ref, mm_ref, gamma_ref, lab_ref, out_ref,
                   *, seed_mix, block_rows, cols):
    """Pass 2: regenerate intensities + min/max normalization + gamma (fused)."""
    x = _synth_block(lab_ref, mu_ref, sg_ref,
                     seed_mix=seed_mix, block_rows=block_rows, cols=cols)
    lo = mm_ref[0]
    hi = mm_ref[1]
    inv = 1.0 / (hi - lo + 1e-6)
    y = jnp.clip((x - lo) * inv, 0.0, 1.0)
    out_ref[...] = jnp.exp(gamma_ref[0] * jnp.log(y + 1e-6))   # y ** gamma


def _choose_layout(n):
    """Flatten the volume to a lane-dense (rows, cols) slab and pick block rows."""
    assert n % 128 == 0, "voxel count must be a multiple of 128"
    cols = 128
    for c in (2048, 1024, 512, 256):
        if n % c == 0:
            cols = c
            break
    rows = n // cols
    # ~4 MiB of f32 per block amortizes the ~0.35us/step grid overhead while
    # keeping the double-buffered working set well under v7x's 64 MiB VMEM.
    target = max(1, (4 << 20) // (cols * 4))
    block_rows = rows                         # fallback: single full-extent block
    if rows > target:
        for br in range(target, 0, -1):
            # int8 labels tile as (32,128): block rows multiple of 32 or full.
            if rows % br == 0 and br % 32 == 0:
                block_rows = br
                break
    return rows, cols, block_rows


class PallasSynthesizer:
    """Pallas counterpart of brainsynth.synthesizer.Synthesizer."""

    def __init__(self, num_labels=NUM_LABELS, gamma=0.85, seed=0):
        # Deterministic per-label GMM parameters (would come from the builder
        # config in the original module).
        self.num_labels = num_labels
        self.mu = jnp.linspace(0.05, 0.95, num_labels).astype(jnp.float32)
        self.sigma = (0.03 + 0.01 * jnp.arange(num_labels)).astype(jnp.float32)
        self.gamma = jnp.array([gamma], jnp.float32)
        self.seed_mix = (int(seed) * _HASH_C0) & 0xFFFFFFFF

    def __call__(self, images, affines=None, surfaces=None):
        affines = affines or {}
        surfaces = surfaces or {}
        # recursive_function(squeeze_nd)(images, n=4, dim=0)
        labels = squeeze_nd(images["segmentation"], n=4, dim=0)   # (C, D, H, W)
        # TODO(synk): affines/surfaces feed builder stages absent from the spec.
        affines = {k: squeeze_nd(v, n=2, dim=0) for k, v in affines.items()}
        surfaces = {k: {kk: squeeze_nd(vv, n=2, dim=0) for kk, vv in v.items()}
                    for k, v in surfaces.items()}

        C, D, H, W = labels.shape
        n = C * D * H * W
        rows, cols, block_rows = _choose_layout(n)
        num_tiles = rows // block_rows

        # int8 labels: 4x less HBM read traffic than int32 (NUM_LABELS <= 127).
        lab2d = labels.reshape(rows, cols).astype(jnp.int8)

        smem = pl.BlockSpec(memory_space=pltpu.MemorySpace.SMEM)
        lab_tile = pl.BlockSpec((block_rows, cols), lambda i: (i, 0))
        out_tile = pl.BlockSpec((block_rows, cols), lambda i: (i, 0))
        mm_tile = pl.BlockSpec((1, 8, 128), lambda i: (i, 0, 0))

        vmem_limit = min(
            96 * 1024 * 1024,
            max(32 * 1024 * 1024, 4 * block_rows * cols * 5 + (2 << 20)),
        )
        cparams = pltpu.CompilerParams(
            dimension_semantics=("parallel",),   # no cross-tile state -> megacore OK
            vmem_limit_bytes=vmem_limit,
        )
        kern_args = dict(seed_mix=self.seed_mix, block_rows=block_rows, cols=cols)

        # Pass 1: per-tile min/max only.
        mins, maxs = pl.pallas_call(
            functools.partial(_minmax_kernel, **kern_args),
            out_shape=(
                jax.ShapeDtypeStruct((num_tiles, 8, 128), jnp.float32),
                jax.ShapeDtypeStruct((num_tiles, 8, 128), jnp.float32),
            ),
            grid=(num_tiles,),
            in_specs=[smem, smem, lab_tile],
            out_specs=(mm_tile, mm_tile),
            compiler_params=cparams,
        )(self.mu, self.sigma, lab2d)

        lo = jnp.min(mins)
        hi = jnp.max(maxs)
        mm = jnp.stack([lo, hi])

        # Pass 2: regenerate + normalize + gamma, single fused f32 store.
        cost = pl.CostEstimate(flops=60 * n, transcendentals=2 * n,
                               bytes_accessed=5 * n)
        out2d = pl.pallas_call(
            functools.partial(_render_kernel, **kern_args),
            out_shape=jax.ShapeDtypeStruct((rows, cols), jnp.float32),
            grid=(num_tiles,),
            in_specs=[smem, smem, smem, smem, lab_tile],
            out_specs=out_tile,
            compiler_params=cparams,
            cost_estimate=cost,
        )(self.mu, self.sigma, mm, self.gamma, lab2d)

        vol = out2d.reshape(C, D, H, W)
        # out.unsqueeze(): restore the batch dimension.
        return {"image": vol[None]}


if __name__ == "__main__":
    key = jax.random.PRNGKey(0)
    # images dict, NCDHW with batch=1 (as expected by squeeze_nd(n=4, dim=0))
    labels = jax.random.randint(key, (1, 1, 16, 16, 16), 0, NUM_LABELS,
                                dtype=jnp.int32)
    synth = PallasSynthesizer(seed=0)
    out = synth({"segmentation": labels})
    img = jax.block_until_ready(out["image"])
    assert img.shape == (1, 1, 16, 16, 16)
    assert bool(jnp.all(jnp.isfinite(img)))
    print("KERNEL_OK")
</pallas_src>

<mosaic_0001>
module attributes {stable_mosaic.version = 11 : i64} {
  func.func @_minmax_kernel(%arg0: i32, %arg1: memref<8xf32, #tpu.memory_space<smem>>, %arg2: memref<8xf32, #tpu.memory_space<smem>>, %arg3: memref<2x2048xi8, #tpu.memory_space<vmem>>, %arg4: memref<1x8x128xf32, #tpu.memory_space<vmem>>, %arg5: memref<1x8x128xf32, #tpu.memory_space<vmem>>) attributes {dimension_semantics = [#tpu.dimension_semantics<parallel>], iteration_bounds = array<i64: 1>, scalar_prefetch = 0 : i64, scratch_operands = 0 : i64, tpu.core_type = #tpu.core_type<tc>, window_params = [{transform_indices = @transform_0, window_bounds = array<i64: 8>}, {transform_indices = @transform_1, window_bounds = array<i64: 8>}, {transform_indices = @transform_2, window_bounds = array<i64: 2, 2048>}, {transform_indices = @transform_3, window_bounds = array<i64: 1, 8, 128>}, {transform_indices = @transform_4, window_bounds = array<i64: 1, 8, 128>}]} {
    %c0 = arith.constant 0 : index
    %c0_0 = arith.constant 0 : index
    %0 = vector.load %arg3[%c0, %c0_0] : memref<2x2048xi8, #tpu.memory_space<vmem>>, vector<2x2048xi8>
    %1 = arith.extsi %0 : vector<2x2048xi8> to vector<2x2048xi32>
    %c2_i32 = arith.constant 2 : i32
    %2 = arith.muli %arg0, %c2_i32 : i32
    %3 = tpu.iota {dimensions = array<i32: 0>} : vector<2x2048xi32>
    %4 = tpu.iota {dimensions = array<i32: 1>} : vector<2x2048xi32>
    %5 = vector.broadcast %2 : i32 to vector<2x2048xi32>
    %6 = arith.addi %5, %3 : vector<2x2048xi32>
    %c2048_i32 = arith.constant 2048 : i32
    %7 = vector.broadcast %c2048_i32 : i32 to vector<2x2048xi32>
    %8 = arith.muli %6, %7 : vector<2x2048xi32>
    %9 = arith.addi %8, %4 : vector<2x2048xi32>
    %c0_i32 = arith.constant 0 : i32
    %10 = vector.broadcast %c0_i32 : i32 to vector<2x2048xi32>
    %11 = arith.addi %9, %10 : vector<2x2048xi32>
    %c16_i32 = arith.constant 16 : i32
    %12 = vector.broadcast %c16_i32 : i32 to vector<2x2048xi32>
    %13 = arith.shrsi %11, %12 : vector<2x2048xi32>
    %c65535_i32 = arith.constant 65535 : i32
    %14 = vector.broadcast %c65535_i32 : i32 to vector<2x2048xi32>
    %15 = arith.andi %13, %14 : vector<2x2048xi32>
    %16 = arith.xori %11, %15 : vector<2x2048xi32>
    %c2146121005_i32 = arith.constant 2146121005 : i32
    %17 = vector.broadcast %c2146121005_i32 : i32 to vector<2x2048xi32>
    %18 = arith.muli %16, %17 : vector<2x2048xi32>
    %c15_i32 = arith.constant 15 : i32
    %19 = vector.broadcast %c15_i32 : i32 to vector<2x2048xi32>
    %20 = arith.shrsi %18, %19 : vector<2x2048xi32>
    %c131071_i32 = arith.constant 131071 : i32
    %21 = vector.broadcast %c131071_i32 : i32 to vector<2x2048xi32>
    %22 = arith.andi %20, %21 : vector<2x2048xi32>
    %23 = arith.xori %18, %22 : vector<2x2048xi32>
    %c-2073254261_i32 = arith.constant -2073254261 : i32
    %24 = vector.broadcast %c-2073254261_i32 : i32 to vector<2x2048xi32>
    %25 = arith.muli %23, %24 : vector<2x2048xi32>
    %c16_i32_1 = arith.constant 16 : i32
    %26 = vector.broadcast %c16_i32_1 : i32 to vector<2x2048xi32>
    %27 = arith.shrsi %25, %26 : vector<2x2048xi32>
    %c65535_i32_2 = arith.constant 65535 : i32
    %28 = vector.broadcast %c65535_i32_2 : i32 to vector<2x2048xi32>
    %29 = arith.andi %27, %28 : vector<2x2048xi32>
    %30 = arith.xori %25, %29 : vector<2x2048xi32>
    %c9_i32 = arith.constant 9 : i32
    %31 = vector.broadcast %c9_i32 : i32 to vector<2x2048xi32>
    %32 = arith.shrsi %30, %31 : vector<2x2048xi32>
    %c8388607_i32 = arith.constant 8388607 : i32
    %33 = vector.broadcast %c8388607_i32 : i32 to vector<2x2048xi32>
    %34 = arith.andi %32, %33 : vector<2x2048xi32>
    %35 = arith.sitofp %34 : vector<2x2048xi32> to vector<2x2048xf32>
    %cst = arith.constant 1.1920929E-7 : f32
    %36 = vector.broadcast %cst : f32 to vector<2x2048xf32>
    %37 = arith.mulf %35, %36 : vector<2x2048xf32>
    %cst_3 = arith.constant 2.000000e+00 : f32
    %38 = vector.broadcast %cst_3 : f32 to vector<2x2048xf32>
    %39 = arith.mulf %38, %37 : vector<2x2048xf32>
    %cst_4 = arith.constant 1.000000e+00 : f32
    %40 = vector.broadcast %cst_4 : f32 to vector<2x2048xf32>
    %41 = arith.subf %39, %40 : vector<2x2048xf32>
    %cst_5 = arith.constant 0.000000e+00 : f32
    %42 = vector.broadcast %cst_5 : f32 to vector<2x2048xf32>
    %cst_6 = arith.constant 0.000000e+00 : f32
    %43 = vector.broadcast %cst_6 : f32 to vector<2x2048xf32>
    %c0_i32_7 = arith.constant 0 : i32
    %44 = vector.broadcast %c0_i32_7 : i32 to vector<2x2048xi32>
    %45 = arith.cmpi eq, %1, %44 : vector<2x2048xi32>
    %c0_8 = arith.constant 0 : index
    %46 = memref.load %arg1[%c0_8] : memref<8xf32, #tpu.memory_space<smem>>
    %47 = vector.broadcast %46 : f32 to vector<2x2048xf32>
    %48 = arith.select %45, %47, %42 : vector<2x2048xi1>, vector<2x2048xf32>
    %c0_9 = arith.constant 0 : index
    %49 = memref.load %arg2[%c0_9] : memref<8xf32, #tpu.memory_space<smem>>
    %50 = vector.broadcast %49 : f32 to vector<2x2048xf32>
    %51 = arith.select %45, %50, %43 : vector<2x2048xi1>, vector<2x2048xf32>
    %c1_i32 = arith.constant 1 : i32
    %52 = vector.broadcast %c1_i32 : i32 to vector<2x2048xi32>
    %53 = arith.cmpi eq, %1, %52 : vector<2x2048xi32>
    %c1 = arith.constant 1 : index
    %54 = memref.load %arg1[%c1] : memref<8xf32, #tpu.memory_space<smem>>
    %55 = vector.broadcast %54 : f32 to vector<2x2048xf32>
    %56 = arith.select %53, %55, %48 : vector<2x2048xi1>, vector<2x2048xf32>
    %c1_10 = arith.constant 1 : index
    %57 = memref.load %arg2[%c1_10] : memref<8xf32, #tpu.memory_space<smem>>
    %58 = vector.broadcast %57 : f32 to vector<2x2048xf32>
    %59 = arith.select %53, %58, %51 : vector<2x2048xi1>, vector<2x2048xf32>
    %c2_i32_11 = arith.constant 2 : i32
    %60 = vector.broadcast %c2_i32_11 : i32 to vector<2x2048xi32>
    %61 = arith.cmpi eq, %1, %60 : vector<2x2048xi32>
    %c2 = arith.constant 2 : index
    %62 = memref.load %arg1[%c2] : memref<8xf32, #tpu.memory_space<smem>>
    %63 = vector.broadcast %62 : f32 to vector<2x2048xf32>
    %64 = arith.select %61, %63, %56 : vector<2x2048xi1>, vector<2x2048xf32>
    %c2_12 = arith.constant 2 : index
    %65 = memref.load %arg2[%c2_12] : memref<8xf32, #tpu.memory_space<smem>>
    %66 = vector.broadcast %65 : f32 to vector<2x2048xf32>
    %67 = arith.select %61, %66, %59 : vector<2x2048xi1>, vector<2x2048xf32>
    %c3_i32 = arith.constant 3 : i32
    %68 = vector.broadcast %c3_i32 : i32 to vector<2x2048xi32>
    %69 = arith.cmpi eq, %1, %68 : vector<2x2048xi32>
    %c3 = arith.constant 3 : index
    %70 = memref.load %arg1[%c3] : memref<8xf32, #tpu.memory_space<smem>>
    %71 = vector.broadcast %70 : f32 to vector<2x2048xf32>
    %72 = arith.select %69, %71, %64 : vector<2x2048xi1>, vector<2x2048xf32>
    %c3_13 = arith.constant 3 : index
    %73 = memref.load %arg2[%c3_13] : memref<8xf32, #tpu.memory_space<smem>>
    %74 = vector.broadcast %73 : f32 to vector<2x2048xf32>
    %75 = arith.select %69, %74, %67 : vector<2x2048xi1>, vector<2x2048xf32>
    %c4_i32 = arith.constant 4 : i32
    %76 = vector.broadcast %c4_i32 : i32 to vector<2x2048xi32>
    %77 = arith.cmpi eq, %1, %76 : vector<2x2048xi32>
    %c4 = arith.constant 4 : index
    %78 = memref.load %arg1[%c4] : memref<8xf32, #tpu.memory_space<smem>>
    %79 = vector.broadcast %78 : f32 to vector<2x2048xf32>
    %80 = arith.select %77, %79, %72 : vector<2x2048xi1>, vector<2x2048xf32>
    %c4_14 = arith.constant 4 : index
    %81 = memref.load %arg2[%c4_14] : memref<8xf32, #tpu.memory_space<smem>>
    %82 = vector.broadcast %81 : f32 to vector<2x2048xf32>
    %83 = arith.select %77, %82, %75 : vector<2x2048xi1>, vector<2x2048xf32>
    %c5_i32 = arith.constant 5 : i32
    %84 = vector.broadcast %c5_i32 : i32 to vector<2x2048xi32>
    %85 = arith.cmpi eq, %1, %84 : vector<2x2048xi32>
    %c5 = arith.constant 5 : index
    %86 = memref.load %arg1[%c5] : memref<8xf32, #tpu.memory_space<smem>>
    %87 = vector.broadcast %86 : f32 to vector<2x2048xf32>
    %88 = arith.select %85, %87, %80 : vector<2x2048xi1>, vector<2x2048xf32>
    %c5_15 = arith.constant 5 : index
    %89 = memref.load %arg2[%c5_15] : memref<8xf32, #tpu.memory_space<smem>>
    %90 = vector.broadcast %89 : f32 to vector<2x2048xf32>
    %91 = arith.select %85, %90, %83 : vector<2x2048xi1>, vector<2x2048xf32>
    %c6_i32 = arith.constant 6 : i32
    %92 = vector.broadcast %c6_i32 : i32 to vector<2x2048xi32>
    %93 = arith.cmpi eq, %1, %92 : vector<2x2048xi32>
    %c6 = arith.constant 6 : index
    %94 = memref.load %arg1[%c6] : memref<8xf32, #tpu.memory_space<smem>>
    %95 = vector.broadcast %94 : f32 to vector<2x2048xf32>
    %96 = arith.select %93, %95, %88 : vector<2x2048xi1>, vector<2x2048xf32>
    %c6_16 = arith.constant 6 : index
    %97 = memref.load %arg2[%c6_16] : memref<8xf32, #tpu.memory_space<smem>>
    %98 = vector.broadcast %97 : f32 to vector<2x2048xf32>
    %99 = arith.select %93, %98, %91 : vector<2x2048xi1>, vector<2x2048xf32>
    %c7_i32 = arith.constant 7 : i32
    %100 = vector.broadcast %c7_i32 : i32 to vector<2x2048xi32>
    %101 = arith.cmpi eq, %1, %100 : vector<2x2048xi32>
    %c7 = arith.constant 7 : index
    %102 = memref.load %arg1[%c7] : memref<8xf32, #tpu.memory_space<smem>>
    %103 = vector.broadcast %102 : f32 to vector<2x2048xf32>
    %104 = arith.select %101, %103, %96 : vector<2x2048xi1>, vector<2x2048xf32>
    %c7_17 = arith.constant 7 : index
    %105 = memref.load %arg2[%c7_17] : memref<8xf32, #tpu.memory_space<smem>>
    %106 = vector.broadcast %105 : f32 to vector<2x2048xf32>
    %107 = arith.select %101, %106, %99 : vector<2x2048xi1>, vector<2x2048xf32>
    %108 = arith.mulf %107, %41 : vector<2x2048xf32>
    %109 = arith.addf %104, %108 : vector<2x2048xf32>
    %110 = vector.shape_cast %109 : vector<2x2048xf32> to vector<1x2x2048xf32>
    %cst_18 = arith.constant dense<0x7F800000> : vector<1xf32>
    %111 = vector.multi_reduction <minimumf>, %110, %cst_18 [1, 2] : vector<1x2x2048xf32> to vector<1xf32>
    %112 = vector.shape_cast %111 : vector<1xf32> to vector<1x1x1xf32>
    %113 = vector.extract %112[0, 0, 0] : f32 from vector<1x1x1xf32>
    %114 = vector.broadcast %113 : f32 to vector<1x8x128xf32>
    %c0_19 = arith.constant 0 : index
    %c0_20 = arith.constant 0 : index
    %c0_21 = arith.constant 0 : index
    %115 = vector.load %arg4[%c0_19, %c0_20, %c0_21] : memref<1x8x128xf32, #tpu.memory_space<vmem>>, vector<1x8x128xf32>
    tpu.vector_store %arg4[%c0_19, %c0_20, %c0_21], %114 {strides = array<i32>} : memref<1x8x128xf32, #tpu.memory_space<vmem>>, vector<1x8x128xf32>,
    %116 = vector.shape_cast %109 : vector<2x2048xf32> to vector<1x2x2048xf32>
    %cst_22 = arith.constant dense<0xFF800000> : vector<1xf32>
    %117 = vector.multi_reduction <maximumf>, %116, %cst_22 [1, 2] : vector<1x2x2048xf32> to vector<1xf32>
    %118 = vector.shape_cast %117 : vector<1xf32> to vector<1x1x1xf32>
    %119 = vector.extract %118[0, 0, 0] : f32 from vector<1x1x1xf32>
    %120 = vector.broadcast %119 : f32 to vector<1x8x128xf32>
    %c0_23 = arith.constant 0 : index
    %c0_24 = arith.constant 0 : index
    %c0_25 = arith.constant 0 : index
    %121 = vector.load %arg5[%c0_23, %c0_24, %c0_25] : memref<1x8x128xf32, #tpu.memory_space<vmem>>, vector<1x8x128xf32>
    tpu.vector_store %arg5[%c0_23, %c0_24, %c0_25], %120 {strides = array<i32>} : memref<1x8x128xf32, #tpu.memory_space<vmem>>, vector<1x8x128xf32>,
    return
  }
  func.func @transform_0(%arg0: i32) -> i32 {
    %c0_i32 = arith.constant 0 : i32
    %c0_i32_0 = arith.constant 0 : i32
    return %c0_i32 : i32
  }
  func.func @transform_1(%arg0: i32) -> i32 {
    %c0_i32 = arith.constant 0 : i32
    %c0_i32_0 = arith.constant 0 : i32
    return %c0_i32 : i32
  }
  func.func @transform_2(%arg0: i32) -> (i32, i32) {
    %c0_i32 = arith.constant 0 : i32
    %c0_i32_0 = arith.constant 0 : i32
    return %arg0, %c0_i32 : i32, i32
  }
  func.func @transform_3(%arg0: i32) -> (i32, i32, i32) {
    %c0_i32 = arith.constant 0 : i32
    %c0_i32_0 = arith.constant 0 : i32
    %c0_i32_1 = arith.constant 0 : i32
    return %arg0, %c0_i32, %c0_i32_0 : i32, i32, i32
  }
  func.func @transform_4(%arg0: i32) -> (i32, i32, i32) {
    %c0_i32 = arith.constant 0 : i32
    %c0_i32_0 = arith.constant 0 : i32
    %c0_i32_1 = arith.constant 0 : i32
    return %arg0, %c0_i32, %c0_i32_0 : i32, i32, i32
  }
}

</mosaic_0001>

<bundles_post_ra>
// kernel: tpu_custom_call.1
= control target key start
LH: loop header
LB: loop body
LE: loop exit
PB: predicated region body
PF: predicated region fallthrough
CT: control target
= control target key end

     0   :  { %10 = vsyncpa [#allocation5], 0  ;;  %s1532_s0 = inlined_call_operand.hbm [shape: f32[8], index: 0, kind: input, shape index: {}]   ;;  %s1533_s1 = inlined_call_operand.vmem [shape: f32[8], index: 1, kind: input, shape index: {}]   ;;  %s1534_s2 = inlined_call_operand.hbm [shape: s8[2,2048], index: 2, kind: input, shape index: {}]   ;;  %s1535_s3 = inlined_call_operand.hbm [shape: f32[1,8,128], index: 3, kind: output, shape index: {0}]   ;;  %s1536_s4 = inlined_call_operand.hbm [shape: f32[1,8,128], index: 4, kind: output, shape index: {1}]  }
   0x1   :  { %11 = vsyncpa [#allocation6], 0 }
   0x2   :  { %12 = vsyncpa [#allocation3], 0 }
   0x3   :  { %13 = vsyncpa [#allocation4], 0 }
   0x4   :  { %14 = vsyncpa [#allocation11], 0  ;;  %s29_s17 = sshll.u32 %s1533_s1, 4  ;;  %s979_s18 = smov [#allocation2]   ;;  %s30_s17 = int_to_ptr.vmem [resolvable:$true] %s29_s17 }
   0x5   :  { %22 = dma.hbm_to_smem %s1532_s0, 16, %s979_s18, [#allocation5]  }
   0x6   :  { %s897_s21 = scalar_lea.vmem %s30_s17, 16  ;;  %p902_p1 = scmp.lt.s32.totalorder %s30_s17, %s30_s17 }
   0x7   :  { %p898_p0 = scmp.ne.s32.totalorder %s30_s17, %s897_s21  ;;  %p903_p2 = scmp.lt.s32.totalorder %s897_s21, %s897_s21 }
   0x9   :  { %p904_p3 = por %p903_p2, %p902_p1 }
   0xb   :  { %p905_p4 = pnand %p904_p3, %p898_p0 }
   0xd   :  { %908 = shalt.err (!%p905_p4)
}
   0xe   :  { %s980_s22 = smov [#allocation7]   ;;  %s981_s23 = smov [#allocation8]  }
   0xf   :  { %32 = dma.vmem_to_smem %s30_s17, 16, %s980_s22, [#allocation6]  }
  0x10   :  { %s39_s24 = sshll.u32 %s981_s23, 4  ;;  %s40_s24 = int_to_ptr.vmem [resolvable:$true] %s39_s24 }
  0x11   :  { %s917_s25 = scalar_lea.vmem %s40_s24, 256  ;;  %p922_p6 = scmp.lt.s32.totalorder %s40_s24, %s40_s24 }
  0x12   :  { %p918_p5 = scmp.ne.s32.totalorder %s40_s24, %s917_s25  ;;  %p923_p7 = scmp.lt.s32.totalorder %s917_s25, %s917_s25 }
  0x14   :  { %p924_p8 = por %p923_p7, %p922_p6 }
  0x16   :  { %p925_p9 = pnand %p924_p8, %p918_p5 }
  0x18   :  { %928 = shalt.err (!%p925_p9)
}
  0x19   :  { %42 = dma.hbm_to_vmem [thread:$0]  %s1534_s2, 256, %s40_s24, [#allocation3]  }
  0x1a   :  { %969 = dma.done.wait [#allocation5], 16  }
  0x1b   :  { %970 = vsyncadd [#allocation5], 4294967280 }
  0x1c   :  { %971 = dma.done.wait [#allocation6], 16  }
  0x1d   :  { %972 = vsyncadd [#allocation6], 4294967280 }
  0x1e   :  { %973 = dma.done.wait [#allocation3], 256  }
  0x1f   :  { %974 = vsyncadd [#allocation3], 4294967040 }
  0x20   :  { %52 = sfence }
  0x21   :  { %v53_v0 = vld [vmem:[#allocation8] sm:$0xff]  ;;  %v64_v1 = vlaneseq  ;;  %s382_s26 = sld [smem:[#allocation2]]  ;;  %v54_v2 = vld [vmem:[#allocation8 + $0x8] sm:$0xff]  ;;  %s982_s15 = smov [#allocation9]  }
  0x22   :  { %s392_s27 = sld [smem:[#allocation7]]  ;;  %v1018_v3 = vunpack.c.0.s8 %v53_v0  ;;  %v1020_v4 = vunpack.c.1.s8 %v53_v0  ;;  %v1022_v5 = vunpack.c.2.s8 %v53_v0  ;;  %v1024_v7 = vunpack.c.3.s8 %v53_v0  ;;  %s761_s16 = sshll.u32 %s982_s15, 4  ;;  %s762_s16 = int_to_ptr.vmem [resolvable:$true] %s761_s16 }
  0x23   :  { %v67_v6 = vand.u32 127, %v64_v1  ;;  %v1026_v8 = vunpack.c.0.s8 %v54_v2  ;;  %v1028_v9 = vunpack.c.1.s8 %v54_v2  ;;  %v65_v10 = vshrl.u32 %v64_v1, 7  ;;  %s1086_s2 = sld [smem:[#allocation2 + $0x1]]  ;;  %s929_s18 = scalar_lea.vmem %s762_s16, 128 }
  0x24   :  { %v1030_v11 = vunpack.c.2.s8 %v54_v2  ;;  %v1032_v12 = vunpack.c.3.s8 %v54_v2  ;;  %vm374_vm0 = vcmp.eq.s32.totalorder %v1018_v3, 0  ;;  %vm375_vm1 = vcmp.eq.s32.totalorder %v1020_v4, 0  ;;  %s1096_s28 = sld [smem:[#allocation7 + $0x1]]  ;;  %p930_p10 = scmp.ne.s32.totalorder %s762_s16, %s929_s18 }
  0x25   :  { %v68_v13 = vadd.s32 128, %v67_v6  ;;  %v69_v14 = vadd.s32 256, %v67_v6  ;;  %v70_v15 = vadd.s32 384, %v67_v6  ;;  %v71_v16 = vadd.s32 512, %v67_v6  ;;  %s1146_s29 = sld [smem:[#allocation2 + $0x2]]  ;;  %p934_p11 = scmp.lt.s32.totalorder %s762_s16, %s762_s16 }
  0x26   :  { %v72_v17 = vadd.s32 640, %v67_v6  ;;  %v73_v18 = vadd.s32 768, %v67_v6  ;;  %v74_v19 = vadd.s32 896, %v67_v6  ;;  %v75_v20 = vadd.s32 1024, %v67_v6  ;;  %s1152_s30 = sld [smem:[#allocation7 + $0x2]]  ;;  %p935_p12 = scmp.lt.s32.totalorder %s929_s18, %s929_s18 }
  0x27   :  { %v76_v21 = vadd.s32 1152, %v67_v6  ;;  %v77_v22 = vadd.s32 1280, %v67_v6  ;;  %v78_v23 = vadd.s32 1408, %v67_v6  ;;  %v79_v24 = vadd.s32 1536, %v67_v6  ;;  %s1202_s5 = sld [smem:[#allocation2 + $0x3]] }
  0x28   :  { %v80_v25 = vadd.s32 1664, %v67_v6  ;;  %v85_v26 = vmul.u32 2048, %v65_v10  ;;  %v81_v27 = vadd.s32 1792, %v67_v6  ;;  %v82_v28 = vadd.s32 1920, %v67_v6  ;;  %s1208_s6 = sld [smem:[#allocation7 + $0x3]]  ;;  %p936_p13 = por %p935_p12, %p934_p11 }
  0x29   :  { %v1034_v29 = vstv %s382_s26  ;;  %v1036_v30 = vstv %s392_s27  ;;  %vm376_vm2 = vcmp.eq.s32.totalorder %v1022_v5, 0  ;;  %vm377_vm3 = vcmp.eq.s32.totalorder %v1024_v7, 0  ;;  %s1246_s7 = sld [smem:[#allocation2 + $0x4]] }
  0x2a   :  { %v86_v31 = vadd.s32 %v85_v26, %v67_v6  ;;  %v87_v32 = vadd.s32 %v85_v26, %v68_v13  ;;  %v88_v33 = vadd.s32 %v85_v26, %v69_v14  ;;  %v89_v34 = vadd.s32 %v85_v26, %v70_v15  ;;  %s1252_s8 = sld [smem:[#allocation7 + $0x4]]  ;;  %p937_p0 = pnand %p936_p13, %p930_p10 }
  0x2b   :  { %v90_v35 = vadd.s32 %v85_v26, %v71_v16  ;;  %v91_v36 = vadd.s32 %v85_v26, %v72_v17  ;;  %v92_v37 = vadd.s32 %v85_v26, %v73_v18  ;;  %v93_v38 = vadd.s32 %v85_v26, %v74_v19  ;;  %s1294_s9 = sld [smem:[#allocation2 + $0x5]] }
  0x2c   :  { %v94_v39 = vadd.s32 %v85_v26, %v75_v20  ;;  %v95_v40 = vadd.s32 %v85_v26, %v76_v21  ;;  %v96_v41 = vadd.s32 %v85_v26, %v77_v22  ;;  %v97_v42 = vadd.s32 %v85_v26, %v78_v23  ;;  %s1300_s10 = sld [smem:[#allocation7 + $0x5]] }
  0x2d   :  { %v98_v43 = vadd.s32 %v85_v26, %v79_v24  ;;  %v99_v44 = vadd.s32 %v85_v26, %v80_v25  ;;  %v100_v45 = vadd.s32 %v85_v26, %v81_v27  ;;  %v101_v46 = vadd.s32 %v85_v26, %v82_v28  ;;  %s1338_s11 = sld [smem:[#allocation2 + $0x6]] }
  0x2e   :  { %v786_v47 = vshrl.u32 %v86_v31, 16  ;;  %v787_v48 = vshrl.u32 %v87_v32, 16  ;;  %v788_v49 = vshrl.u32 %v88_v33, 16  ;;  %v789_v50 = vshrl.u32 %v89_v34, 16  ;;  %s1344_s12 = sld [smem:[#allocation7 + $0x6]] }
  0x2f   :  { %v790_v51 = vshrl.u32 %v90_v35, 16  ;;  %v791_v52 = vshrl.u32 %v91_v36, 16  ;;  %v792_v53 = vshrl.u32 %v92_v37, 16  ;;  %v793_v54 = vshrl.u32 %v93_v38, 16  ;;  %s1386_s13 = sld [smem:[#allocation2 + $0x7]] }
  0x30   :  { %v794_v55 = vshrl.u32 %v94_v39, 16  ;;  %v795_v56 = vshrl.u32 %v95_v40, 16  ;;  %v796_v57 = vshrl.u32 %v96_v41, 16  ;;  %v797_v58 = vshrl.u32 %v97_v42, 16  ;;  %s1392_s14 = sld [smem:[#allocation7 + $0x7]] }
  0x31   :  { %v798_v59 = vshrl.u32 %v98_v43, 16  ;;  %v799_v60 = vshrl.u32 %v99_v44, 16  ;;  %v800_v61 = vshrl.u32 %v100_v45, 16  ;;  %v801_v62 = vshrl.u32 %v101_v46, 16 }
  0x32   :  { %v134_v63 = vxor.u32 %v786_v47, %v86_v31  ;;  %v135_v0 = vxor.u32 %v787_v48, %v87_v32  ;;  %v136_v1 = vxor.u32 %v788_v49, %v88_v33  ;;  %v137_v2 = vxor.u32 %v789_v50, %v89_v34 }
  0x33   :  { %v138_v6 = vxor.u32 %v790_v51, %v90_v35  ;;  %v139_v10 = vxor.u32 %v791_v52, %v91_v36  ;;  %v140_v13 = vxor.u32 %v792_v53, %v92_v37  ;;  %v141_v14 = vxor.u32 %v793_v54, %v93_v38 }
  0x34   :  { %v142_v15 = vxor.u32 %v794_v55, %v94_v39  ;;  %v143_v16 = vxor.u32 %v795_v56, %v95_v40  ;;  %v144_v17 = vxor.u32 %v796_v57, %v96_v41  ;;  %v145_v18 = vxor.u32 %v797_v58, %v97_v42 }
  0x35   :  { %v146_v19 = vxor.u32 %v798_v59, %v98_v43  ;;  %v147_v20 = vxor.u32 %v799_v60, %v99_v44  ;;  %v148_v21 = vxor.u32 %v800_v61, %v100_v45  ;;  %v149_v22 = vxor.u32 %v801_v62, %v101_v46 }
  0x36   :  { %v150_v23 = vmul.u32 2146121005, %v134_v63  ;;  %v151_v24 = vmul.u32 2146121005, %v135_v0  ;;  %v1045_v25 = vsel %vm374_vm0, %v1034_v29, 0.0  ;;  %v1050_v26 = vsel %vm375_vm1, %v1034_v29, 0.0 }
  0x37   :  { %v152_v27 = vmul.u32 2146121005, %v136_v1  ;;  %v153_v28 = vmul.u32 2146121005, %v137_v2  ;;  %v1055_v31 = vsel %vm376_vm2, %v1034_v29, 0.0  ;;  %v1060_v32 = vsel %vm377_vm3, %v1034_v29, 0.0 }
  0x38   :  { %v154_v33 = vmul.u32 2146121005, %v138_v6  ;;  %v155_v34 = vmul.u32 2146121005, %v139_v10  ;;  %v802_v35 = vshrl.u32 %v150_v23, 15  ;;  %v803_v36 = vshrl.u32 %v151_v24, 15 }
  0x39   :  { %v156_v37 = vmul.u32 2146121005, %v140_v13  ;;  %v157_v38 = vmul.u32 2146121005, %v141_v14  ;;  %v804_v39 = vshrl.u32 %v152_v27, 15  ;;  %v805_v40 = vshrl.u32 %v153_v28, 15 }
  0x3a   :  { %v158_v41 = vmul.u32 2146121005, %v142_v15  ;;  %v159_v42 = vmul.u32 2146121005, %v143_v16  ;;  %v806_v43 = vshrl.u32 %v154_v33, 15  ;;  %v807_v44 = vshrl.u32 %v155_v34, 15 }
  0x3b   :  { %vm378_vm4 = vcmp.eq.s32.totalorder %v1026_v8, 0  ;;  %vm379_vm5 = vcmp.eq.s32.totalorder %v1028_v9, 0  ;;  %v160_v45 = vmul.u32 2146121005, %v144_v17  ;;  %v161_v46 = vmul.u32 2146121005, %v145_v18 }
  0x3c   :  { %v808_v47 = vshrl.u32 %v156_v37, 15  ;;  %v809_v48 = vshrl.u32 %v157_v38, 15  ;;  %vm380_vm6 = vcmp.eq.s32.totalorder %v1030_v11, 0  ;;  %vm381_vm7 = vcmp.eq.s32.totalorder %v1032_v12, 0 }
  0x3d   :  { %v162_v49 = vmul.u32 2146121005, %v146_v19  ;;  %v163_v50 = vmul.u32 2146121005, %v147_v20  ;;  %v810_v51 = vshrl.u32 %v158_v41, 15  ;;  %v811_v52 = vshrl.u32 %v159_v42, 15 }
  0x3e   :  { %v164_v53 = vmul.u32 2146121005, %v148_v21  ;;  %v165_v54 = vmul.u32 2146121005, %v149_v22  ;;  %v812_v55 = vshrl.u32 %v160_v45, 15  ;;  %v813_v56 = vshrl.u32 %v161_v46, 15 }
  0x3f   :  { %v814_v57 = vshrl.u32 %v162_v49, 15  ;;  %v815_v58 = vshrl.u32 %v163_v50, 15  ;;  %v198_v59 = vxor.u32 %v802_v35, %v150_v23  ;;  %v199_v60 = vxor.u32 %v803_v36, %v151_v24 }
  0x40   :  { %v816_v61 = vshrl.u32 %v164_v53, 15  ;;  %v817_v62 = vshrl.u32 %v165_v54, 15  ;;  %v200_v63 = vxor.u32 %v804_v39, %v152_v27  ;;  %v201_v0 = vxor.u32 %v805_v40, %v153_v28 }
  0x41   :  { %v202_v1 = vxor.u32 %v806_v43, %v154_v33  ;;  %v203_v2 = vxor.u32 %v807_v44, %v155_v34  ;;  %v204_v6 = vxor.u32 %v808_v47, %v156_v37  ;;  %v205_v10 = vxor.u32 %v809_v48, %v157_v38 }
  0x42   :  { %v206_v13 = vxor.u32 %v810_v51, %v158_v41  ;;  %v207_v14 = vxor.u32 %v811_v52, %v159_v42  ;;  %v208_v15 = vxor.u32 %v812_v55, %v160_v45  ;;  %v209_v16 = vxor.u32 %v813_v56, %v161_v46 }
  0x43   :  { %v210_v17 = vxor.u32 %v814_v57, %v162_v49  ;;  %v211_v18 = vxor.u32 %v815_v58, %v163_v50  ;;  %v212_v19 = vxor.u32 %v816_v61, %v164_v53  ;;  %v213_v20 = vxor.u32 %v817_v62, %v165_v54 }
  0x44   :  { %v214_v21 = vmul.u32 2221713035, %v198_v59  ;;  %v215_v22 = vmul.u32 2221713035, %v199_v60  ;;  %v1069_v23 = vsel %vm378_vm4, %v1034_v29, 0.0  ;;  %v1074_v24 = vsel %vm379_vm5, %v1034_v29, 0.0 }
  0x45   :  { %1537 = vst [vmem:[#allocation17_spill] sm:$0xff] %v1074_v24  ;;  %v216_v27 = vmul.u32 2221713035, %v200_v63  ;;  %v217_v28 = vmul.u32 2221713035, %v201_v0  ;;  %v1079_v33 = vsel %vm380_vm6, %v1034_v29, 0.0 }
  0x46   :  { %1538 = vst [vmem:[#allocation18_spill] sm:$0xff] %v1079_v33  ;;  %v1084_v34 = vsel %vm381_vm7, %v1034_v29, 0.0  ;;  %v218_v35 = vmul.u32 2221713035, %v202_v1  ;;  %v219_v36 = vmul.u32 2221713035, %v203_v2 }
  0x47   :  { %1539 = vst [vmem:[#allocation19_spill] sm:$0xff] %v1084_v34  ;;  %v818_v37 = vshrl.u32 %v214_v21, 16  ;;  %v819_v38 = vshrl.u32 %v215_v22, 16  ;;  %v220_v39 = vmul.u32 2221713035, %v204_v6  ;;  %v820_v41 = vshrl.u32 %v216_v27, 16 }
  0x48   :  { %v221_v40 = vmul.u32 2221713035, %v205_v10  ;;  %v821_v42 = vshrl.u32 %v217_v28, 16  ;;  %v222_v43 = vmul.u32 2221713035, %v206_v13  ;;  %v822_v45 = vshrl.u32 %v218_v35, 16 }
  0x49   :  { %v223_v44 = vmul.u32 2221713035, %v207_v14  ;;  %v823_v46 = vshrl.u32 %v219_v36, 16  ;;  %v224_v47 = vmul.u32 2221713035, %v208_v15  ;;  %v824_v49 = vshrl.u32 %v220_v39, 16 }
  0x4a   :  { %v225_v48 = vmul.u32 2221713035, %v209_v16  ;;  %v825_v50 = vshrl.u32 %v221_v40, 16  ;;  %v226_v51 = vmul.u32 2221713035, %v210_v17  ;;  %v826_v29 = vshrl.u32 %v222_v43, 16 }
  0x4b   :  { %v227_v52 = vmul.u32 2221713035, %v211_v18  ;;  %v827_v53 = vshrl.u32 %v223_v44, 16  ;;  %v228_v54 = vmul.u32 2221713035, %v212_v19  ;;  %v828_v56 = vshrl.u32 %v224_v47, 16 }
  0x4c   :  { %v229_v55 = vmul.u32 2221713035, %v213_v20  ;;  %v829_v57 = vshrl.u32 %v225_v48, 16  ;;  %v830_v58 = vshrl.u32 %v226_v51, 16  ;;  %v262_v60 = vxor.u32 %v818_v37, %v214_v21 }
  0x4d   :  { %v831_v59 = vshrl.u32 %v227_v52, 16  ;;  %v263_v61 = vxor.u32 %v819_v38, %v215_v22  ;;  %v832_v62 = vshrl.u32 %v228_v54, 16  ;;  %v264_v0 = vxor.u32 %v820_v41, %v216_v27 }
  0x4e   :  { %v833_v63 = vshrl.u32 %v229_v55, 16  ;;  %v265_v1 = vxor.u32 %v821_v42, %v217_v28  ;;  %v266_v2 = vxor.u32 %v822_v45, %v218_v35  ;;  %v267_v6 = vxor.u32 %v823_v46, %v219_v36 }
  0x4f   :  { %v268_v10 = vxor.u32 %v824_v49, %v220_v39  ;;  %v269_v13 = vxor.u32 %v825_v50, %v221_v40  ;;  %v270_v14 = vxor.u32 %v826_v29, %v222_v43  ;;  %v271_v15 = vxor.u32 %v827_v53, %v223_v44 }
  0x50   :  { %v272_v16 = vxor.u32 %v828_v56, %v224_v47  ;;  %v273_v17 = vxor.u32 %v829_v57, %v225_v48  ;;  %v274_v18 = vxor.u32 %v830_v58, %v226_v51  ;;  %v275_v19 = vxor.u32 %v831_v59, %v227_v52 }
  0x51   :  { %v276_v20 = vxor.u32 %v832_v62, %v228_v54  ;;  %v277_v34 = vxor.u32 %v833_v63, %v229_v55  ;;  %v834_v33 = vshrl.u32 %v262_v60, 9  ;;  %v835_v24 = vshrl.u32 %v263_v61, 9 }
  0x52   :  { %v836_v21 = vshrl.u32 %v264_v0, 9  ;;  %v837_v22 = vshrl.u32 %v265_v1, 9  ;;  %v838_v37 = vshrl.u32 %v266_v2, 9  ;;  %v839_v38 = vshrl.u32 %v267_v6, 9 }
  0x53   :  { %v840_v27 = vshrl.u32 %v268_v10, 9  ;;  %v841_v28 = vshrl.u32 %v269_v13, 9  ;;  %v842_v35 = vshrl.u32 %v270_v14, 9  ;;  %v843_v36 = vshrl.u32 %v271_v15, 9 }
  0x54   :  { %v844_v39 = vshrl.u32 %v272_v16, 9  ;;  %v845_v40 = vshrl.u32 %v273_v17, 9  ;;  %v846_v41 = vshrl.u32 %v274_v18, 9  ;;  %v847_v42 = vshrl.u32 %v275_v19, 9 }
  0x55   :  { %v848_v43 = vshrl.u32 %v276_v20, 9  ;;  %v849_v44 = vshrl.u32 %v277_v34, 9  ;;  %v310_v45 = vcvt.s32.f32 %v834_v33  ;;  %v311_v46 = vcvt.s32.f32 %v835_v24 }
  0x56   :  { %v312_v47 = vcvt.s32.f32 %v836_v21  ;;  %v313_v48 = vcvt.s32.f32 %v837_v22  ;;  %v314_v49 = vcvt.s32.f32 %v838_v37  ;;  %v315_v50 = vcvt.s32.f32 %v839_v38 }
  0x57   :  { %v316_v51 = vcvt.s32.f32 %v840_v27  ;;  %v317_v52 = vcvt.s32.f32 %v841_v28  ;;  %v318_v29 = vcvt.s32.f32 %v842_v35  ;;  %v319_v53 = vcvt.s32.f32 %v843_v36 }
  0x58   :  { %v320_v54 = vcvt.s32.f32 %v844_v39  ;;  %v321_v55 = vcvt.s32.f32 %v845_v40  ;;  %v322_v56 = vcvt.s32.f32 %v846_v41  ;;  %v323_v57 = vcvt.s32.f32 %v847_v42 }
  0x59   :  { %v324_v58 = vcvt.s32.f32 %v848_v43  ;;  %v325_v59 = vcvt.s32.f32 %v849_v44  ;;  %v326_v60 = vmul.f32 1.1920929e-07, %v310_v45  ;;  %v327_v61 = vmul.f32 1.1920929e-07, %v311_v46 }
  0x5a   :  { %v328_v62 = vmul.f32 1.1920929e-07, %v312_v47  ;;  %v329_v34 = vmul.f32 1.1920929e-07, %v313_v48  ;;  %v330_v33 = vmul.f32 1.1920929e-07, %v314_v49  ;;  %v331_v24 = vmul.f32 1.1920929e-07, %v315_v50 }
  0x5b   :  { %v332_v63 = vmul.f32 1.1920929e-07, %v316_v51  ;;  %v333_v0 = vmul.f32 1.1920929e-07, %v317_v52  ;;  %v334_v1 = vmul.f32 1.1920929e-07, %v318_v29  ;;  %v335_v2 = vmul.f32 1.1920929e-07, %v319_v53 }
  0x5c   :  { %v336_v6 = vmul.f32 1.1920929e-07, %v320_v54  ;;  %v337_v10 = vmul.f32 1.1920929e-07, %v321_v55  ;;  %v338_v13 = vmul.f32 1.1920929e-07, %v322_v56  ;;  %v339_v14 = vmul.f32 1.1920929e-07, %v323_v57 }
  0x5d   :  { %v340_v15 = vmul.f32 1.1920929e-07, %v324_v58  ;;  %v341_v16 = vmul.f32 1.1920929e-07, %v325_v59  ;;  %v342_v17 = vmul.f32 2.0, %v326_v60  ;;  %v343_v18 = vmul.f32 2.0, %v327_v61 }
  0x5e   :  { %v344_v19 = vmul.f32 2.0, %v328_v62  ;;  %v345_v20 = vmul.f32 2.0, %v329_v34  ;;  %v346_v21 = vmul.f32 2.0, %v330_v33  ;;  %v347_v22 = vmul.f32 2.0, %v331_v24 }
  0x5f   :  { %v348_v37 = vmul.f32 2.0, %v332_v63  ;;  %v349_v38 = vmul.f32 2.0, %v333_v0  ;;  %v350_v27 = vmul.f32 2.0, %v334_v1  ;;  %v351_v28 = vmul.f32 2.0, %v335_v2 }
  0x60   :  { %v352_v35 = vmul.f32 2.0, %v336_v6  ;;  %v353_v36 = vmul.f32 2.0, %v337_v10  ;;  %v354_v39 = vmul.f32 2.0, %v338_v13  ;;  %v355_v40 = vmul.f32 2.0, %v339_v14  ;;  %v1540_v13 = vld [vmem:[#allocation17_spill] sm:$0xff]  ;;  %v1541_v14 = vld [vmem:[#allocation18_spill] sm:$0xff] }
  0x61   :  { %v356_v41 = vmul.f32 2.0, %v340_v15  ;;  %v357_v42 = vmul.f32 2.0, %v341_v16  ;;  %v1088_v43 = vadd.f32 -1.0, %v342_v17  ;;  %v1090_v44 = vadd.f32 -1.0, %v343_v18  ;;  %v1542_v15 = vld [vmem:[#allocation19_spill] sm:$0xff] }
  0x62   :  { %v1092_v45 = vadd.f32 -1.0, %v344_v19  ;;  %v1094_v46 = vadd.f32 -1.0, %v345_v20  ;;  %v1098_v47 = vadd.f32 -1.0, %v346_v21  ;;  %v1100_v48 = vadd.f32 -1.0, %v347_v22 }
  0x63   :  { %v1102_v49 = vadd.f32 -1.0, %v348_v37  ;;  %v1104_v50 = vadd.f32 -1.0, %v349_v38  ;;  %v1106_v51 = vadd.f32 -1.0, %v350_v27  ;;  %v1108_v52 = vadd.f32 -1.0, %v351_v28 }
  0x64   :  { %v1110_v29 = vadd.f32 -1.0, %v352_v35  ;;  %v1112_v53 = vadd.f32 -1.0, %v353_v36  ;;  %v1114_v54 = vadd.f32 -1.0, %v354_v39  ;;  %v1116_v55 = vadd.f32 -1.0, %v355_v40 }
  0x65   :  { %v1118_v56 = vadd.f32 -1.0, %v356_v41  ;;  %v1120_v57 = vadd.f32 -1.0, %v357_v42  ;;  %v394_v58 = vsel %vm374_vm0, %v1036_v30, 0.0  ;;  %v395_v59 = vsel %vm375_vm1, %v1036_v30, 0.0 }
  0x66   :  { %v396_v60 = vsel %vm376_vm2, %v1036_v30, 0.0  ;;  %v397_v61 = vsel %vm377_vm3, %v1036_v30, 0.0  ;;  %v398_v62 = vsel %vm378_vm4, %v1036_v30, 0.0  ;;  %v399_v34 = vsel %vm379_vm5, %v1036_v30, 0.0 }
  0x67   :  { %v400_v33 = vsel %vm380_vm6, %v1036_v30, 0.0  ;;  %v401_v24 = vsel %vm381_vm7, %v1036_v30, 0.0  ;;  %vm402_vm8 = vcmp.eq.s32.totalorder %v1018_v3, 1  ;;  %vm403_vm9 = vcmp.eq.s32.totalorder %v1020_v4, 1 }
  0x68   :  { %vm404_vm10 = vcmp.eq.s32.totalorder %v1022_v5, 1  ;;  %vm405_vm11 = vcmp.eq.s32.totalorder %v1024_v7, 1  ;;  %vm406_vm12 = vcmp.eq.s32.totalorder %v1026_v8, 1  ;;  %vm407_vm13 = vcmp.eq.s32.totalorder %v1028_v9, 1 }
  0x69   :  { %vm408_vm14 = vcmp.eq.s32.totalorder %v1030_v11, 1  ;;  %vm409_vm15 = vcmp.eq.s32.totalorder %v1032_v12, 1  ;;  %v411_v30 = vstv %s1086_s2  ;;  %v421_v63 = vstv %s1096_s28 }
  0x6a   :  { %vm430_vm0 = vcmp.eq.s32.totalorder %v1018_v3, 2  ;;  %vm431_vm1 = vcmp.eq.s32.totalorder %v1020_v4, 2  ;;  %v412_v0 = vsel %vm402_vm8, %v411_v30, %v1045_v25  ;;  %v413_v1 = vsel %vm403_vm9, %v411_v30, %v1050_v26 }
  0x6b   :  { %v414_v2 = vsel %vm404_vm10, %v411_v30, %v1055_v31  ;;  %v415_v6 = vsel %vm405_vm11, %v411_v30, %v1060_v32  ;;  %v416_v10 = vsel %vm406_vm12, %v411_v30, %v1069_v23  ;;  %v417_v25 = vsel %vm407_vm13, %v411_v30, %v1540_v13 }
  0x6c   :  { %v418_v26 = vsel %vm408_vm14, %v411_v30, %v1541_v14  ;;  %v419_v31 = vsel %vm409_vm15, %v411_v30, %v1542_v15  ;;  %v422_v16 = vsel %vm402_vm8, %v421_v63, %v394_v58  ;;  %v423_v32 = vsel %vm403_vm9, %v421_v63, %v395_v59 }
  0x6d   :  { %v424_v23 = vsel %vm404_vm10, %v421_v63, %v396_v60  ;;  %v425_v17 = vsel %vm405_vm11, %v421_v63, %v397_v61  ;;  %v426_v18 = vsel %vm406_vm12, %v421_v63, %v398_v62  ;;  %v427_v19 = vsel %vm407_vm13, %v421_v63, %v399_v34 }
  0x6e   :  { %v428_v20 = vsel %vm408_vm14, %v421_v63, %v400_v33  ;;  %v429_v21 = vsel %vm409_vm15, %v421_v63, %v401_v24  ;;  %vm432_vm2 = vcmp.eq.s32.totalorder %v1022_v5, 2  ;;  %vm433_vm3 = vcmp.eq.s32.totalorder %v1024_v7, 2 }
  0x6f   :  { %vm434_vm4 = vcmp.eq.s32.totalorder %v1026_v8, 2  ;;  %vm435_vm5 = vcmp.eq.s32.totalorder %v1028_v9, 2  ;;  %vm436_vm6 = vcmp.eq.s32.totalorder %v1030_v11, 2  ;;  %vm437_vm7 = vcmp.eq.s32.totalorder %v1032_v12, 2 }
  0x70   :  { %v439_v22 = vstv %s1146_s29  ;;  %v449_v37 = vstv %s1152_s30  ;;  %vm458_vm8 = vcmp.eq.s32.totalorder %v1018_v3, 3  ;;  %vm459_vm9 = vcmp.eq.s32.totalorder %v1020_v4, 3 }
  0x71   :  { %v440_v38 = vsel %vm430_vm0, %v439_v22, %v412_v0  ;;  %v441_v27 = vsel %vm431_vm1, %v439_v22, %v413_v1  ;;  %v442_v28 = vsel %vm432_vm2, %v439_v22, %v414_v2  ;;  %v443_v35 = vsel %vm433_vm3, %v439_v22, %v415_v6 }
  0x72   :  { %v444_v36 = vsel %vm434_vm4, %v439_v22, %v416_v10  ;;  %v445_v39 = vsel %vm435_vm5, %v439_v22, %v417_v25  ;;  %v446_v40 = vsel %vm436_vm6, %v439_v22, %v418_v26  ;;  %v447_v41 = vsel %vm437_vm7, %v439_v22, %v419_v31 }
  0x73   :  { %v450_v42 = vsel %vm430_vm0, %v449_v37, %v422_v16  ;;  %v451_v58 = vsel %vm431_vm1, %v449_v37, %v423_v32  ;;  %v452_v59 = vsel %vm432_vm2, %v449_v37, %v424_v23  ;;  %v453_v60 = vsel %vm433_vm3, %v449_v37, %v425_v17 }
  0x74   :  { %v454_v61 = vsel %vm434_vm4, %v449_v37, %v426_v18  ;;  %v455_v62 = vsel %vm435_vm5, %v449_v37, %v427_v19  ;;  %v456_v34 = vsel %vm436_vm6, %v449_v37, %v428_v20  ;;  %v457_v33 = vsel %vm437_vm7, %v449_v37, %v429_v21 }
  0x75   :  { %vm460_vm10 = vcmp.eq.s32.totalorder %v1022_v5, 3  ;;  %vm461_vm11 = vcmp.eq.s32.totalorder %v1024_v7, 3  ;;  %vm462_vm12 = vcmp.eq.s32.totalorder %v1026_v8, 3  ;;  %vm463_vm13 = vcmp.eq.s32.totalorder %v1028_v9, 3 }
  0x76   :  { %vm464_vm14 = vcmp.eq.s32.totalorder %v1030_v11, 3  ;;  %vm465_vm15 = vcmp.eq.s32.totalorder %v1032_v12, 3  ;;  %v467_v24 = vstv %s1202_s5  ;;  %v477_v30 = vstv %s1208_s6 }
  0x77   :  { %vm486_vm0 = vcmp.eq.s32.totalorder %v1018_v3, 4  ;;  %vm487_vm1 = vcmp.eq.s32.totalorder %v1020_v4, 4  ;;  %v468_v63 = vsel %vm458_vm8, %v467_v24, %v440_v38  ;;  %v469_v0 = vsel %vm459_vm9, %v467_v24, %v441_v27 }
  0x78   :  { %v470_v1 = vsel %vm460_vm10, %v467_v24, %v442_v28  ;;  %v471_v2 = vsel %vm461_vm11, %v467_v24, %v443_v35  ;;  %v472_v6 = vsel %vm462_vm12, %v467_v24, %v444_v36  ;;  %v473_v10 = vsel %vm463_vm13, %v467_v24, %v445_v39 }
  0x79   :  { %v474_v13 = vsel %vm464_vm14, %v467_v24, %v446_v40  ;;  %v475_v25 = vsel %vm465_vm15, %v467_v24, %v447_v41  ;;  %v478_v14 = vsel %vm458_vm8, %v477_v30, %v450_v42  ;;  %v479_v26 = vsel %vm459_vm9, %v477_v30, %v451_v58 }
  0x7a   :  { %v480_v15 = vsel %vm460_vm10, %v477_v30, %v452_v59  ;;  %v481_v31 = vsel %vm461_vm11, %v477_v30, %v453_v60  ;;  %v482_v16 = vsel %vm462_vm12, %v477_v30, %v454_v61  ;;  %v483_v32 = vsel %vm463_vm13, %v477_v30, %v455_v62 }
  0x7b   :  { %v484_v23 = vsel %vm464_vm14, %v477_v30, %v456_v34  ;;  %v485_v17 = vsel %vm465_vm15, %v477_v30, %v457_v33  ;;  %vm488_vm2 = vcmp.eq.s32.totalorder %v1022_v5, 4  ;;  %vm489_vm3 = vcmp.eq.s32.totalorder %v1024_v7, 4 }
  0x7c   :  { %vm490_vm4 = vcmp.eq.s32.totalorder %v1026_v8, 4  ;;  %vm491_vm5 = vcmp.eq.s32.totalorder %v1028_v9, 4  ;;  %vm492_vm6 = vcmp.eq.s32.totalorder %v1030_v11, 4  ;;  %vm493_vm7 = vcmp.eq.s32.totalorder %v1032_v12, 4 }
  0x7d   :  { %v495_v18 = vstv %s1246_s7  ;;  %v505_v19 = vstv %s1252_s8  ;;  %vm514_vm8 = vcmp.eq.s32.totalorder %v1018_v3, 5  ;;  %vm515_vm9 = vcmp.eq.s32.totalorder %v1020_v4, 5 }
  0x7e   :  { %v496_v20 = vsel %vm486_vm0, %v495_v18, %v468_v63  ;;  %v497_v21 = vsel %vm487_vm1, %v495_v18, %v469_v0  ;;  %v498_v22 = vsel %vm488_vm2, %v495_v18, %v470_v1  ;;  %v499_v37 = vsel %vm489_vm3, %v495_v18, %v471_v2 }
  0x7f   :  { %v500_v38 = vsel %vm490_vm4, %v495_v18, %v472_v6  ;;  %v501_v27 = vsel %vm491_vm5, %v495_v18, %v473_v10  ;;  %v502_v28 = vsel %vm492_vm6, %v495_v18, %v474_v13  ;;  %v503_v35 = vsel %vm493_vm7, %v495_v18, %v475_v25 }
  0x80   :  { %v506_v36 = vsel %vm486_vm0, %v505_v19, %v478_v14  ;;  %v507_v39 = vsel %vm487_vm1, %v505_v19, %v479_v26  ;;  %v508_v40 = vsel %vm488_vm2, %v505_v19, %v480_v15  ;;  %v509_v41 = vsel %vm489_vm3, %v505_v19, %v481_v31 }
  0x81   :  { %v510_v42 = vsel %vm490_vm4, %v505_v19, %v482_v16  ;;  %v511_v58 = vsel %vm491_vm5, %v505_v19, %v483_v32  ;;  %v512_v59 = vsel %vm492_vm6, %v505_v19, %v484_v23  ;;  %v513_v60 = vsel %vm493_vm7, %v505_v19, %v485_v17 }
  0x82   :  { %vm516_vm10 = vcmp.eq.s32.totalorder %v1022_v5, 5  ;;  %vm517_vm11 = vcmp.eq.s32.totalorder %v1024_v7, 5  ;;  %vm518_vm12 = vcmp.eq.s32.totalorder %v1026_v8, 5  ;;  %vm519_vm13 = vcmp.eq.s32.totalorder %v1028_v9, 5 }
  0x83   :  { %vm520_vm14 = vcmp.eq.s32.totalorder %v1030_v11, 5  ;;  %vm521_vm15 = vcmp.eq.s32.totalorder %v1032_v12, 5  ;;  %v523_v61 = vstv %s1294_s9  ;;  %v533_v62 = vstv %s1300_s10 }
  0x84   :  { %vm542_vm0 = vcmp.eq.s32.totalorder %v1018_v3, 6  ;;  %vm543_vm1 = vcmp.eq.s32.totalorder %v1020_v4, 6  ;;  %v524_v34 = vsel %vm514_vm8, %v523_v61, %v496_v20  ;;  %v525_v33 = vsel %vm515_vm9, %v523_v61, %v497_v21 }
  0x85   :  { %v526_v24 = vsel %vm516_vm10, %v523_v61, %v498_v22  ;;  %v527_v30 = vsel %vm517_vm11, %v523_v61, %v499_v37  ;;  %v528_v63 = vsel %vm518_vm12, %v523_v61, %v500_v38  ;;  %v529_v0 = vsel %vm519_vm13, %v523_v61, %v501_v27 }
  0x86   :  { %v530_v1 = vsel %vm520_vm14, %v523_v61, %v502_v28  ;;  %v531_v2 = vsel %vm521_vm15, %v523_v61, %v503_v35  ;;  %v534_v6 = vsel %vm514_vm8, %v533_v62, %v506_v36  ;;  %v535_v10 = vsel %vm515_vm9, %v533_v62, %v507_v39 }
  0x87   :  { %v536_v13 = vsel %vm516_vm10, %v533_v62, %v508_v40  ;;  %v537_v25 = vsel %vm517_vm11, %v533_v62, %v509_v41  ;;  %v538_v14 = vsel %vm518_vm12, %v533_v62, %v510_v42  ;;  %v539_v26 = vsel %vm519_vm13, %v533_v62, %v511_v58 }
  0x88   :  { %v540_v15 = vsel %vm520_vm14, %v533_v62, %v512_v59  ;;  %v541_v31 = vsel %vm521_vm15, %v533_v62, %v513_v60  ;;  %vm544_vm2 = vcmp.eq.s32.totalorder %v1022_v5, 6  ;;  %vm545_vm3 = vcmp.eq.s32.totalorder %v1024_v7, 6 }
  0x89   :  { %vm546_vm4 = vcmp.eq.s32.totalorder %v1026_v8, 6  ;;  %vm547_vm5 = vcmp.eq.s32.totalorder %v1028_v9, 6  ;;  %vm548_vm6 = vcmp.eq.s32.totalorder %v1030_v11, 6  ;;  %vm549_vm7 = vcmp.eq.s32.totalorder %v1032_v12, 6 }
  0x8a   :  { %v551_v16 = vstv %s1338_s11  ;;  %v561_v32 = vstv %s1344_s12  ;;  %vm570_vm8 = vcmp.eq.s32.totalorder %v1018_v3, 7  ;;  %vm571_vm9 = vcmp.eq.s32.totalorder %v1020_v4, 7 }
  0x8b   :  { %v552_v23 = vsel %vm542_vm0, %v551_v16, %v524_v34  ;;  %v553_v17 = vsel %vm543_vm1, %v551_v16, %v525_v33  ;;  %v554_v18 = vsel %vm544_vm2, %v551_v16, %v526_v24  ;;  %v555_v19 = vsel %vm545_vm3, %v551_v16, %v527_v30 }
  0x8c   :  { %v556_v20 = vsel %vm546_vm4, %v551_v16, %v528_v63  ;;  %v557_v21 = vsel %vm547_vm5, %v551_v16, %v529_v0  ;;  %v558_v22 = vsel %vm548_vm6, %v551_v16, %v530_v1  ;;  %v559_v37 = vsel %vm549_vm7, %v551_v16, %v531_v2 }
  0x8d   :  { %v562_v38 = vsel %vm542_vm0, %v561_v32, %v534_v6  ;;  %v563_v27 = vsel %vm543_vm1, %v561_v32, %v535_v10  ;;  %v564_v28 = vsel %vm544_vm2, %v561_v32, %v536_v13  ;;  %v565_v35 = vsel %vm545_vm3, %v561_v32, %v537_v25 }
  0x8e   :  { %v566_v36 = vsel %vm546_vm4, %v561_v32, %v538_v14  ;;  %v567_v39 = vsel %vm547_vm5, %v561_v32, %v539_v26  ;;  %v568_v40 = vsel %vm548_vm6, %v561_v32, %v540_v15  ;;  %v569_v41 = vsel %vm549_vm7, %v561_v32, %v541_v31 }
  0x8f   :  { %vm572_vm10 = vcmp.eq.s32.totalorder %v1022_v5, 7  ;;  %vm573_vm11 = vcmp.eq.s32.totalorder %v1024_v7, 7  ;;  %vm574_vm12 = vcmp.eq.s32.totalorder %v1026_v8, 7  ;;  %vm575_vm13 = vcmp.eq.s32.totalorder %v1028_v9, 7 }
  0x90   :  { %vm576_vm14 = vcmp.eq.s32.totalorder %v1030_v11, 7  ;;  %vm577_vm15 = vcmp.eq.s32.totalorder %v1032_v12, 7  ;;  %v579_v42 = vstv %s1386_s13  ;;  %v589_v58 = vstv %s1392_s14 }
  0x91   :  { %v614_v59 = vcombine.low %v1088_v43, %v1090_v44  ;;  %v615_v60 = vcombine.low %v1092_v45, %v1094_v46  ;;  %v580_v61 = vsel %vm570_vm8, %v579_v42, %v552_v23  ;;  %v581_v62 = vsel %vm571_vm9, %v579_v42, %v553_v17 }
  0x92   :  { %v582_v34 = vsel %vm572_vm10, %v579_v42, %v554_v18  ;;  %v583_v33 = vsel %vm573_vm11, %v579_v42, %v555_v19  ;;  %vm670_vm0 = vcmask 1041408   ;;  %v584_v24 = vsel %vm574_vm12, %v579_v42, %v556_v20 }
  0x93   :  { %v585_v43 = vsel %vm575_vm13, %v579_v42, %v557_v21  ;;  %v586_v44 = vsel %vm576_vm14, %v579_v42, %v558_v22  ;;  %v587_v45 = vsel %vm577_vm15, %v579_v42, %v559_v37  ;;  %v590_v46 = vsel %vm570_vm8, %v589_v58, %v562_v38 }
  0x94   :  { %v591_v30 = vsel %vm571_vm9, %v589_v58, %v563_v27  ;;  %v592_v63 = vsel %vm572_vm10, %v589_v58, %v564_v28  ;;  %v593_v0 = vsel %vm573_vm11, %v589_v58, %v565_v35  ;;  %v594_v1 = vsel %vm574_vm12, %v589_v58, %v566_v36 }
  0x95   :  { %v595_v2 = vsel %vm575_vm13, %v589_v58, %v567_v39  ;;  %v596_v6 = vsel %vm576_vm14, %v589_v58, %v568_v40  ;;  %v597_v3 = vsel %vm577_vm15, %v589_v58, %v569_v41  ;;  %v616_v4 = vcombine.low %v1098_v47, %v1100_v48 }
  0x96   :  { %v617_v5 = vcombine.low %v1102_v49, %v1104_v50  ;;  %v618_v7 = vcombine.low %v1106_v51, %v1108_v52  ;;  %v619_v8 = vcombine.low %v1110_v29, %v1112_v53  ;;  %v620_v9 = vcombine.low %v1114_v54, %v1116_v55 }
  0x97   :  { %v621_v11 = vcombine.low %v1118_v56, %v1120_v57  ;;  %v630_v12 = vmul.f32 %v614_v59, %v590_v46  ;;  %v631_v10 = vmul.f32 %v615_v60, %v591_v30  ;;  %v632_v13 = vmul.f32 %v616_v4, %v592_v63 }
  0x98   :  { %v633_v25 = vmul.f32 %v617_v5, %v593_v0  ;;  %v634_v47 = vmul.f32 %v618_v7, %v594_v1  ;;  %v635_v48 = vmul.f32 %v619_v8, %v595_v2  ;;  %v636_v14 = vmul.f32 %v620_v9, %v596_v6 }
  0x99   :  { %v637_v49 = vmul.f32 %v621_v11, %v597_v3  ;;  %v638_v50 = vadd.f32 %v630_v12, %v580_v61  ;;  %v639_v26 = vadd.f32 %v631_v10, %v581_v62  ;;  %v640_v51 = vadd.f32 %v632_v13, %v582_v34 }
  0x9a   :  { %v641_v52 = vadd.f32 %v633_v25, %v583_v33  ;;  %v642_v15 = vadd.f32 %v634_v47, %v584_v24  ;;  %v643_v29 = vadd.f32 %v635_v48, %v585_v43  ;;  %v644_v53 = vadd.f32 %v636_v14, %v586_v44 }
  0x9b   :  { %v1488_v31 = vadd.f32 %v637_v49, %v587_v45  ;;  %v654_v54 = vcombine.high %v638_v50, %v638_v50  ;;  %v655_v55 = vcombine.high %v639_v26, %v639_v26  ;;  %v656_v56 = vcombine.high %v640_v51, %v640_v51 }
  0x9c   :  { %v657_v57 = vcombine.high %v641_v52, %v641_v52  ;;  %v658_v16 = vcombine.high %v642_v15, %v642_v15  ;;  %v659_v32 = vcombine.high %v643_v29, %v643_v29  ;;  %v660_v23 = vcombine.high %v644_v53, %v644_v53 }
  0x9d   :  { %v661_v17 = vcombine.high %v1488_v31, %v1488_v31  ;;  %v671_v18 = vsel %vm670_vm0, %v638_v50, inf  ;;  %v672_v19 = vsel %vm670_vm0, %v654_v54, inf  ;;  %v673_v20 = vsel %vm670_vm0, %v639_v26, inf }
  0x9e   :  { %v674_v21 = vsel %vm670_vm0, %v655_v55, inf  ;;  %v675_v22 = vsel %vm670_vm0, %v640_v51, inf  ;;  %v677_v37 = vsel %vm670_vm0, %v656_v56, inf  ;;  %v679_v28 = vsel %vm670_vm0, %v641_v52, inf }
  0x9f   :  { %v676_v38 = vmin.f32 %v671_v18, %v675_v22  ;;  %v678_v27 = vmin.f32 %v672_v19, %v677_v37  ;;  %v681_v35 = vsel %vm670_vm0, %v657_v57, inf  ;;  %v680_v36 = vmin.f32 %v673_v20, %v679_v28 }
  0xa0   :  { %v682_v39 = vmin.f32 %v674_v21, %v681_v35  ;;  %v683_v40 = vsel %vm670_vm0, %v642_v15, inf  ;;  %v685_v41 = vsel %vm670_vm0, %v658_v16, inf  ;;  %v687_v59 = vsel %vm670_vm0, %v643_v29, inf }
  0xa1   :  { %v684_v42 = vmin.f32 %v676_v38, %v683_v40  ;;  %v686_v58 = vmin.f32 %v678_v27, %v685_v41  ;;  %v689_v60 = vsel %vm670_vm0, %v659_v32, inf  ;;  %v688_v61 = vmin.f32 %v680_v36, %v687_v59 }
  0xa2   :  { %v690_v62 = vmin.f32 %v682_v39, %v689_v60  ;;  %v691_v34 = vsel %vm670_vm0, %v644_v53, inf  ;;  %v693_v33 = vsel %vm670_vm0, %v660_v23, inf  ;;  %v695_v44 = vsel %vm670_vm0, %v1488_v31, inf }
  0xa3   :  { %v692_v24 = vmin.f32 %v684_v42, %v691_v34  ;;  %v694_v43 = vmin.f32 %v686_v58, %v693_v33  ;;  %v697_v45 = vsel %vm670_vm0, %v661_v17, inf  ;;  %v696_v46 = vmin.f32 %v688_v61, %v695_v44 }
  0xa4   :  { %v698_v30 = vmin.f32 %v690_v62, %v697_v45  ;;  %v713_v63 = vsel %vm670_vm0, %v638_v50, -inf  ;;  %v714_v0 = vsel %vm670_vm0, %v654_v54, -inf  ;;  %v715_v2 = vsel %vm670_vm0, %v639_v26, -inf }
  0xa5   :  { %v699_v1 = vmin.f32 %v692_v24, %v694_v43  ;;  %v716_v6 = vsel %vm670_vm0, %v655_v55, -inf  ;;  %v717_v3 = vsel %vm670_vm0, %v640_v51, -inf  ;;  %v719_v7 = vsel %vm670_vm0, %v656_v56, -inf }
  0xa6   :  { %v700_v4 = vmin.f32 %v696_v46, %v698_v30  ;;  %v718_v5 = vmax.f32 %v713_v63, %v717_v3  ;;  %v721_v8 = vsel %vm670_vm0, %v641_v52, -inf  ;;  %v720_v9 = vmax.f32 %v714_v0, %v719_v7 }
  0xa7   :  { %v722_v11 = vmax.f32 %v715_v2, %v721_v8  ;;  %v723_v12 = vsel %vm670_vm0, %v657_v57, -inf  ;;  %v725_v10 = vsel %vm670_vm0, %v642_v15, -inf  ;;  %v727_v48 = vsel %vm670_vm0, %v658_v16, -inf }
  0xa8   :  { %v701_v13 = vmin.f32 %v699_v1, %v700_v4  ;;  %v724_v25 = vmax.f32 %v716_v6, %v723_v12  ;;  %v726_v47 = vmax.f32 %v718_v5, %v725_v10  ;;  %v728_v14 = vmax.f32 %v720_v9, %v727_v48 }
  0xa9   :  { %v729_v49 = vsel %vm670_vm0, %v643_v29, -inf  ;;  %v731_v50 = vsel %vm670_vm0, %v659_v32, -inf  ;;  %v733_v26 = vsel %vm670_vm0, %v644_v53, -inf  ;;  %v735_v55 = vsel %vm670_vm0, %v660_v23, -inf }
  0xaa   :  { %702 = vmin.xlane.f32.xlu0 %v701_v13  ;;  %v730_v51 = vmax.f32 %v722_v11, %v729_v49  ;;  %v732_v52 = vmax.f32 %v724_v25, %v731_v50  ;;  %v734_v54 = vmax.f32 %v726_v47, %v733_v26  ;;  %v736_v56 = vmax.f32 %v728_v14, %v735_v55 }
  0xab   :  { %v737_v15 = vsel %vm670_vm0, %v1488_v31, -inf  ;;  %v739_v57 = vsel %vm670_vm0, %v661_v17, -inf }
  0xac   :  { %v738_v16 = vmax.f32 %v730_v51, %v737_v15  ;;  %v740_v18 = vmax.f32 %v732_v52, %v739_v57  ;;  %v741_v19 = vmax.f32 %v734_v54, %v736_v56 }
  0xae   :  { %v742_v29 = vmax.f32 %v738_v16, %v740_v18 }
  0xb0   :  { %v743_v20 = vmax.f32 %v741_v19, %v742_v29 }
  0xb2   :  { %744 = vmax.xlane.f32.xlu0 %v743_v20 }
 0x133   :  { %v703_v32 = vpop.xlane.xlu0 %702 }
 0x134   :  { %v704_v53 = vrot.slane %v703_v32, 4 }
 0x136   :  { %v705_v21 = vmin.f32 %v703_v32, %v704_v53 }
 0x138   :  { %v706_v22 = vrot.slane %v705_v21, 2 }
 0x13a   :  { %v707_v37 = vmin.f32 %v705_v21, %v706_v22 }
 0x13b   :  { %v745_v38 = vpop.xlane.xlu0 %744 }
 0x13c   :  { %v746_v27 = vrot.slane %v745_v38, 4  ;;  %v708_v23 = vrot.slane %v707_v37, 1 }
 0x13e   :  { %v747_v28 = vmax.f32 %v745_v38, %v746_v27  ;;  %v709_v35 = vmin.f32 %v707_v37, %v708_v23 }
 0x140   :  { %v748_v36 = vrot.slane %v747_v28, 2  ;;  %880 = vpush %v709_v35 }
 0x142   :  { %v749_v31 = vmax.f32 %v747_v28, %v748_v36 }
 0x144   :  { %v750_v17 = vrot.slane %v749_v31, 1 }
 0x146   :  { %v751_v39 = vmax.f32 %v749_v31, %v750_v17 }
 0x148   :  { %882 = vpush %v751_v39 }
 0x171   :  { %s881_s17 = spop %880 }
 0x172   :  { %v711_v40 = vstv %s881_s17 }
 0x173   :  { %712 = vst [vmem:[#allocation9] sm:$0xff] %v711_v40 }
 0x174   :  { %940 = shalt.err (!%p937_p0)
}
 0x175   :  { %764 = dma.vmem_to_hbm [thread:$0]  %s762_s16, 128, %s1535_s3, [#allocation4]  }
 0x176   :  { %s983_s21 = smov [#allocation10]  }
 0x177   :  { %s771_s22 = sshll.u32 %s983_s21, 4  ;;  %s772_s22 = int_to_ptr.vmem [resolvable:$true] %s771_s22 }
 0x178   :  { %s949_s24 = scalar_lea.vmem %s772_s22, 128  ;;  %p954_p2 = scmp.lt.s32.totalorder %s772_s22, %s772_s22 }
 0x179   :  { %s883_s23 = spop %882  ;;  %p950_p1 = scmp.ne.s32.totalorder %s772_s22, %s949_s24 }
 0x17a   :  { %v753_v41 = vstv %s883_s23  ;;  %p955_p3 = scmp.lt.s32.totalorder %s949_s24, %s949_s24 }
 0x17b   :  { %754 = vst [vmem:[#allocation10] sm:$0xff] %v753_v41 }
 0x17c   :  { %p956_p4 = por %p955_p3, %p954_p2 }
 0x17e   :  { %p957_p5 = pnand %p956_p4, %p950_p1 }
 0x180   :  { %960 = shalt.err (!%p957_p5)
}
 0x181   :  { %774 = dma.vmem_to_hbm [thread:$0]  %s772_s22, 128, %s1536_s4, [#allocation11]  }
 0x182   :  { %975 = dma.done.wait [#allocation4], 128  }
 0x183   :  { %976 = vsyncadd [#allocation4], 4294967168 }
 0x184   :  { %977 = dma.done.wait [#allocation11], 128  }
 0x185   :  { %978 = vsyncadd [#allocation11], 4294967168 }
 0x186   :  { %781 = vsyncpa [#allocation3], 1 }
 0x187   :  { %782 = vsyncpa [#allocation4], 1 }
 0x188   :  { %783 = vsyncpa [#allocation11], 1 }
 0x189   :  { %784 = vsyncpa [#allocation5], 1 }
 0x18a   :  { %785 = vsyncpa [#allocation6], 1 }

</bundles_post_ra>
